<compile_context>
chip_gen: v7x
topology: tpu7x:2x2x1
jax: 0.10.0
libtpu: 0.0.40
codegen_flags: <defaults>
</compile_context>

<pallas_src>
import functools
import math

import jax
import jax.numpy as jnp
from jax import lax
from jax.experimental import pallas as pl
from jax.experimental.pallas import tpu as pltpu

LOG_STD_MIN = -5.0
LOG_STD_MAX = 2.0
# std = exp(LOG_STD_MIN + 0.5*(MAX-MIN)*(tanh(z)+1)) == exp(_C0 + _C1*tanh(z))
_C1 = 0.5 * (LOG_STD_MAX - LOG_STD_MIN)
_C0 = LOG_STD_MIN + _C1

_MAX_TILE_N = 2048                 # upper cap on the row tile
_OBS_VMEM_BUDGET = 12 * 1024 * 1024  # budget for the double-buffered obs tiles


def _round_up(x, m):
    return -(-x // m) * m


def _choose_tile(n_rows, hidden, obs_itemsize):
    """Pick a row tile: multiple of the sublane packing, VMEM-budgeted, and
    small enough that the grid has >= 2 blocks when there are enough rows."""
    # sublane packing granule per dtype width (f32: 8, bf16: 16, 8-bit: 32)
    mult = 8 if obs_itemsize >= 4 else (16 if obs_itemsize == 2 else 32)
    # cap from VMEM: two in-flight obs buffers of [tile, H]
    cap = _OBS_VMEM_BUDGET // max(1, 2 * hidden * obs_itemsize)
    cap = max(mult, (cap // mult) * mult)
    tile = min(_MAX_TILE_N, cap, max(mult, _round_up(n_rows, mult)))
    # give the v7x megacore >= 2 grid blocks when there are enough rows
    if n_rows > 2 * mult:
        tile = min(tile, max(mult, _round_up(-(-n_rows // 2), mult)))
    return tile


def _actor_kernel(obs_ref, w_ref, b_ref, out_ref, *, act_dim):
    # obs_ref: [TILE_N, H] (native dtype), w_ref: [H, 2A] f32, b_ref: [1, 2A] f32
    # out_ref: [TILE_N, 2A]
    x = obs_ref[...]
    z = jnp.dot(x, w_ref[...], preferred_element_type=jnp.float32)
    z = z + b_ref[...]                                   # broadcast [1, 2A]

    # tanh/exp run on the EUP (otherwise-idle slot); computing them over all
    # 2A (<128) columns and selecting is cheaper than lane-slicing at column A.
    std_all = jnp.exp(_C0 + _C1 * jnp.tanh(z))
    col = lax.broadcasted_iota(jnp.int32, z.shape, 1)
    out_ref[...] = jnp.where(col < act_dim, z, std_all).astype(out_ref.dtype)


def diag_gaussian_actor_heads(obs2d, w_cat, b_cat, act_dim):
    """obs2d: [N, H]; w_cat: [H, 2A] f32; b_cat: [1, 2A] f32 -> (mu, std) each [N, A]."""
    N, H = obs2d.shape
    two_a = w_cat.shape[1]
    obs_itemsize = jnp.dtype(obs2d.dtype).itemsize
    out_dtype = obs2d.dtype
    out_itemsize = jnp.dtype(out_dtype).itemsize

    tile = _choose_tile(N, H, obs_itemsize)
    grid = (pl.cdiv(N, tile),)           # partial last block handled by Pallas

    # Explicit VMEM limit with headroom (double-buffered obs + out, resident
    # weights counted x2), capped well under v7x's 64 MiB physical.
    vmem_needed = (2 * tile * H * obs_itemsize
                   + 2 * tile * two_a * out_itemsize
                   + 2 * (H * two_a + two_a) * 4)
    vmem_limit = min(32 << 20, vmem_needed + (4 << 20))

    kernel = functools.partial(_actor_kernel, act_dim=act_dim)

    out = pl.pallas_call(
        kernel,
        out_shape=jax.ShapeDtypeStruct((N, two_a), out_dtype),
        grid=grid,
        in_specs=[
            pl.BlockSpec((tile, H), lambda i: (i, 0)),      # obs: tiled over rows
            pl.BlockSpec((H, two_a), lambda i: (0, 0)),     # fused weights: resident
            pl.BlockSpec((1, two_a), lambda i: (0, 0)),     # fused biases: resident
        ],
        out_specs=pl.BlockSpec((tile, two_a), lambda i: (i, 0)),
        compiler_params=pltpu.CompilerParams(
            dimension_semantics=("parallel",),
            vmem_limit_bytes=int(vmem_limit)),
        cost_estimate=pl.CostEstimate(
            flops=2 * N * H * two_a,
            transcendentals=2 * N * two_a,                  # tanh + exp
            bytes_accessed=(obs_itemsize * N * H
                            + out_itemsize * N * two_a
                            + 4 * (H * two_a + two_a)),
        ),
    )(obs2d, w_cat, b_cat)

    mu = out[:, :act_dim]
    std = out[:, act_dim:]
    return mu, std


# ---------------------------------------------------------------------------
# Thin JAX-side equivalent of SquashedNormal (distribution glue, not kernel).
# ---------------------------------------------------------------------------
class SquashedNormal:
    def __init__(self, loc, std):
        self.loc = loc
        self.std = std

    @property
    def mean(self):
        return jnp.tanh(self.loc)

    def log_prob(self, y):
        # y in (-1, 1): base normal log_prob at x = atanh(y) minus log|det J| of tanh.
        x = jnp.arctanh(jnp.clip(y, -1.0 + 1e-6, 1.0 - 1e-6))
        base = (-0.5 * ((x - self.loc) / self.std) ** 2
                - jnp.log(self.std) - 0.5 * math.log(2.0 * math.pi))
        ladj = 2.0 * (math.log(2.0) - x - jax.nn.softplus(-2.0 * x))
        return base - ladj

    def log_likelihood(self, y):
        return self.log_prob(y).sum(axis=2)


class DiagGaussianActor:
    """Pallas-backed diagonal Gaussian (tanh-squashed) policy head."""

    def __init__(self, hidden_dim, act_dim, key):
        k1, k2 = jax.random.split(key)
        # Orthogonal init (QR of a Gaussian), bias = 0 — matches nn.init.orthogonal_.
        g_mu = jax.random.normal(k1, (hidden_dim, act_dim), jnp.float32)
        g_ls = jax.random.normal(k2, (hidden_dim, act_dim), jnp.float32)
        q_mu, _ = jnp.linalg.qr(g_mu)   # [H, A], orthonormal columns
        q_ls, _ = jnp.linalg.qr(g_ls)
        self.act_dim = act_dim
        self.w_mu = q_mu
        self.w_ls = q_ls
        self.b_mu = jnp.zeros((1, act_dim), jnp.float32)
        self.b_ls = jnp.zeros((1, act_dim), jnp.float32)
        # Fused parameters for the single-matmul kernel: [H, 2A] / [1, 2A].
        self.w_cat = jnp.concatenate([self.w_mu, self.w_ls], axis=1)
        self.b_cat = jnp.concatenate([self.b_mu, self.b_ls], axis=1)

    def __call__(self, obs):
        # obs: [B, T, H] (or [N, H]); flatten leading dims, keep native dtype
        # (no f32 force-cast — halves HBM traffic for bf16 obs).
        lead = obs.shape[:-1]
        H = obs.shape[-1]
        obs2d = obs.reshape((-1, H))
        mu, std = diag_gaussian_actor_heads(
            obs2d, self.w_cat, self.b_cat, self.act_dim)
        A = self.act_dim
        mu = mu.reshape(lead + (A,))
        std = std.reshape(lead + (A,))
        return SquashedNormal(mu, std)


if __name__ == "__main__":
    key = jax.random.PRNGKey(0)
    k_obs, k_params = jax.random.split(key)

    batch, seq, hidden_dim, act_dim = 2, 8, 32, 4
    obs = jax.random.normal(k_obs, (batch, seq, hidden_dim), jnp.float32)

    actor = DiagGaussianActor(hidden_dim, act_dim, k_params)
    dist = actor(obs)

    mean = jax.block_until_ready(dist.mean)
    std = jax.block_until_ready(dist.std)

    # Reference check in plain JAX.
    mu_ref = obs @ actor.w_mu + actor.b_mu[0]
    ls_ref = jnp.tanh(obs @ actor.w_ls + actor.b_ls[0])
    ls_ref = LOG_STD_MIN + 0.5 * (LOG_STD_MAX - LOG_STD_MIN) * (ls_ref + 1.0)
    std_ref = jnp.exp(ls_ref)
    assert jnp.allclose(dist.loc, mu_ref, atol=1e-5, rtol=1e-5)
    assert jnp.allclose(std, std_ref, atol=1e-5, rtol=1e-5)
    assert mean.shape == (batch, seq, act_dim)

    print("KERNEL_OK")
</pallas_src>

<mosaic_0001>
module attributes {stable_mosaic.version = 11 : i64} {
  func.func @_actor_kernel(%arg0: i32, %arg1: memref<16x32xf32, #tpu.memory_space<vmem>>, %arg2: memref<32x8xf32, #tpu.memory_space<vmem>>, %arg3: memref<1x8xf32, #tpu.memory_space<vmem>>, %arg4: memref<16x8xf32, #tpu.memory_space<vmem>>) attributes {dimension_semantics = [#tpu.dimension_semantics<parallel>], iteration_bounds = array<i64: 1>, scalar_prefetch = 0 : i64, scratch_operands = 0 : i64, tpu.core_type = #tpu.core_type<tc>, window_params = [{transform_indices = @transform_0, window_bounds = array<i64: 16, 32>}, {pipeline_mode = #tpu.pipeline_mode<synchronous>, transform_indices = @transform_1, window_bounds = array<i64: 32, 8>}, {pipeline_mode = #tpu.pipeline_mode<synchronous>, transform_indices = @transform_2, window_bounds = array<i64: 1, 8>}, {transform_indices = @transform_3, window_bounds = array<i64: 16, 8>}]} {
    %c0 = arith.constant 0 : index
    %c0_0 = arith.constant 0 : index
    %0 = vector.load %arg1[%c0, %c0_0] : memref<16x32xf32, #tpu.memory_space<vmem>>, vector<16x32xf32>
    %c0_1 = arith.constant 0 : index
    %c0_2 = arith.constant 0 : index
    %1 = vector.load %arg2[%c0_1, %c0_2] : memref<32x8xf32, #tpu.memory_space<vmem>>, vector<32x8xf32>
    %cst = arith.constant dense<0.000000e+00> : vector<16x8xf32>
    %2 = tpu.matmul %0, %1, %cst {dimension_numbers = #tpu.dot_dimension_numbers<[1], [0], [0], [1], [0, 0, 1, 1], [], []>} : vector<16x32xf32>, vector<32x8xf32>, vector<16x8xf32> -> vector<16x8xf32>
    %c0_3 = arith.constant 0 : index
    %c0_4 = arith.constant 0 : index
    %3 = vector.load %arg3[%c0_3, %c0_4] : memref<1x8xf32, #tpu.memory_space<vmem>>, vector<1x8xf32>
    %4 = vector.broadcast %3 : vector<1x8xf32> to vector<16x8xf32>
    %5 = arith.addf %2, %4 : vector<16x8xf32>
    %6 = math.tanh %5 : vector<16x8xf32>
    %cst_5 = arith.constant 3.500000e+00 : f32
    %7 = vector.broadcast %cst_5 : f32 to vector<16x8xf32>
    %8 = arith.mulf %7, %6 : vector<16x8xf32>
    %cst_6 = arith.constant -1.500000e+00 : f32
    %9 = vector.broadcast %cst_6 : f32 to vector<16x8xf32>
    %10 = arith.addf %9, %8 : vector<16x8xf32>
    %11 = math.exp %10 : vector<16x8xf32>
    %12 = tpu.iota {dimensions = array<i32: 1>} : vector<16x8xi32>
    %c4_i32 = arith.constant 4 : i32
    %13 = vector.broadcast %c4_i32 : i32 to vector<16x8xi32>
    %14 = arith.cmpi slt, %12, %13 : vector<16x8xi32>
    %15 = arith.select %14, %5, %11 : vector<16x8xi1>, vector<16x8xf32>
    %c0_7 = arith.constant 0 : index
    %c0_8 = arith.constant 0 : index
    %16 = vector.load %arg4[%c0_7, %c0_8] : memref<16x8xf32, #tpu.memory_space<vmem>>, vector<16x8xf32>
    tpu.vector_store %arg4[%c0_7, %c0_8], %15 {strides = array<i32>} : memref<16x8xf32, #tpu.memory_space<vmem>>, vector<16x8xf32>,
    return
  }
  func.func @transform_0(%arg0: i32) -> (i32, i32) {
    %c0_i32 = arith.constant 0 : i32
    %c0_i32_0 = arith.constant 0 : i32
    return %arg0, %c0_i32 : i32, i32
  }
  func.func @transform_1(%arg0: i32) -> (i32, i32) {
    %c0_i32 = arith.constant 0 : i32
    %c0_i32_0 = arith.constant 0 : i32
    %c0_i32_1 = arith.constant 0 : i32
    return %c0_i32, %c0_i32_0 : i32, i32
  }
  func.func @transform_2(%arg0: i32) -> (i32, i32) {
    %c0_i32 = arith.constant 0 : i32
    %c0_i32_0 = arith.constant 0 : i32
    %c0_i32_1 = arith.constant 0 : i32
    return %c0_i32, %c0_i32_0 : i32, i32
  }
  func.func @transform_3(%arg0: i32) -> (i32, i32) {
    %c0_i32 = arith.constant 0 : i32
    %c0_i32_0 = arith.constant 0 : i32
    return %arg0, %c0_i32 : i32, i32
  }
}

</mosaic_0001>

<bundles_post_ra>
// kernel: tpu_custom_call.1
= control target key start
LH: loop header
LB: loop body
LE: loop exit
PB: predicated region body
PF: predicated region fallthrough
CT: control target
= control target key end

     0   :  { %vm27_vm0 = vcmask 261120   ;;  %v119_v21 = vlaneseq  ;;  %vm124_vm2 = vcmask 64512   ;;  %s214_s1 = inlined_call_operand.vmem [shape: f32[32,8], index: 1, kind: input, shape index: {}]   ;;  %s215_s0 = inlined_call_operand.vmem [shape: f32[16,32], index: 0, kind: input, shape index: {}]   ;;  %s216_s2 = inlined_call_operand.vmem [shape: f32[1,8], index: 2, kind: input, shape index: {}]   ;;  %s217_s3 = inlined_call_operand.vmem [shape: f32[16,8], index: 3, kind: output, shape index: {}]  }
   0x1   :  { %v16_v0 = vld [vmem:[%s214_s1] sm:$0xff]  ;;  %v17_v1 = vld [vmem:[%s214_s1 + $0x8] sm:$0xff]  ;;  %v18_v2 = vld [vmem:[%s214_s1 + $0x10] sm:$0xff] }
   0x2   :  { %v151_v3 = vpack.c.bf16 %v17_v1, %v16_v0  ;;  %v19_v4 = vld [vmem:[%s214_s1 + $0x18] sm:$0xff]  ;;  %v14_v5 = vld [vmem:[%s215_s0] sm:$0xff]  ;;  %v15_v7 = vld [vmem:[%s215_s0 + $0x8] sm:$0xff]  ;;  %v120_v22 = vand.u32 127, %v119_v21 }
   0x3   :  { %v155_v6 = vpack.c.bf16 %v19_v4, %v18_v2  ;;  %148 = vmatprep.mubr.msk.f32.mxu0 %vm27_vm0, %v14_v5  ;;  %v131_v8 = vld [vmem:[%s216_s2] ss:$0 sm:$0xff] }
   0x4   :  { %152 = vmatprep.subr.bf16.mxu0 %v151_v3  ;;  %vm121_vm1 = vcmp.lt.s32.totalorder %v120_v22, 4 }
   0x5   :  { %154 = vmatpush3.bf16.msra.mxu0 %v151_v3 }
   0x6   :  { %156 = vmatprep.subr.bf16.mxu0 %v155_v6 }
   0x9   :  { %158 = vmatpush3.bf16.msra.mxu0 %v155_v6 }
   0xc   :  { %149 = vmatmul.mubr.msk.f32.vlgmr.msra.gmra.mrb[0].mxu0 %vm27_vm0, %v15_v7 }
  0xdf   :  { %v150_v9 = vpop.f32.mrb[0].mxu0 }
  0xe0   :  { %v106_v10 = vadd.f32 %v150_v9, %v131_v8  ;;  %v100_v11 = vpop.f32.mrb[1].mxu0 }
  0xe1   :  { %v101_v12 = vadd.f32 %v131_v8, %v100_v11 }
  0xe2   :  { %159 = vtanh.f32 %v106_v10 }
  0xe3   :  { %161 = vtanh.f32 %v101_v12 }
  0xec   :  { %v160_v13 = vpop.eup %159 }
  0xed   :  { %v162_v14 = vpop.eup %161  ;;  %v112_v15 = vmul.f32 3.5, %v160_v13 }
  0xee   :  { %v111_v16 = vmul.f32 3.5, %v162_v14 }
  0xef   :  { %v114_v17 = vadd.f32 -1.5, %v112_v15 }
  0xf0   :  { %v113_v18 = vadd.f32 -1.5, %v111_v16 }
  0xf1   :  { %v117_v19 = vmul.f32 1.442695, %v114_v17 }
  0xf2   :  { %v115_v20 = vmul.f32 1.442695, %v113_v18 }
  0xf3   :  { %163 = vpow2.f32 %v117_v19 }
  0xf4   :  { %165 = vpow2.f32 %v115_v20 }
  0xfd   :  { %v164_v23 = vpop.eup %163 }
  0xfe   :  { %v166_v24 = vpop.eup %165  ;;  %v123_v25 = vsel %vm121_vm1, %v106_v10, %v164_v23 }
  0xff   :  { %126 = vst.msk [vmem:[%s217_s3 + $0x8] sm:$0xff] %vm124_vm2, %v123_v25  ;;  %v122_v26 = vsel %vm121_vm1, %v101_v12, %v166_v24 }
 0x100   :  { %125 = vst.msk [vmem:[%s217_s3] sm:$0xff] %vm124_vm2, %v122_v26 }

</bundles_post_ra>
